<compile_context>
chip_gen: v5e
topology: v5e:2x2
jax: 0.10.0
libtpu: 0.0.40
codegen_flags: <defaults>
</compile_context>

<pallas_src>
import numpy as np
import jax
import jax.numpy as jnp
from jax import lax
from jax.experimental import pallas as pl
from jax.experimental.pallas import tpu as pltpu


_BF16_MIN_CHANNELS = 32   # below this, keep f32 matmul operands (parity with PyTorch f32 convs)


def _full_spec(shape):
    """BlockSpec covering the whole array (constant block index -> stays resident in VMEM)."""
    rank = len(shape)
    return pl.BlockSpec(shape, lambda *_: (0,) * rank)


def _is_v7x():
    try:
        dk = jax.devices()[0].device_kind.lower()
        return ("v7" in dk) or ("tpu7" in dk)
    except Exception:
        return False


def _pick_packing(N, L):
    """Choose (packed, nb, Lp) so every block is lane-dense and the grid has >= 2 steps.

    packed=True : batch packed onto the lane axis, nb sequences per block, block (C, nb*L).
    packed=False: one sequence per block, time lane-padded from L to Lp, block (C, Lp).
    """
    if L % 128 == 0:
        return False, 1, L                       # lane aligned: read (N, C, L) in place
    for nb in range(2, N // 2 + 1):              # nb <= N/2 keeps grid = N/nb >= 2
        if N % nb == 0 and (nb * L) % 128 == 0:
            return True, nb, L
    # No waste-free packing with >=2 grid steps: lane-pad the time axis (masked causal tail).
    return False, 1, ((L + 127) // 128) * 128


def _make_lared_kernel(*, C, Lseg, LB, K, dilations, conv_mode, mm_dtype):
    """Fused LaRed kernel for static (C, Lseg, LB, K, dilations).

    Lseg      : length of one causal segment along the lane axis (L, or lane-padded L).
    LB        : lane width of one block (= NB * Lseg; NB sequences packed per block).
    conv_mode : "im2col" -> one (C, K*C) @ (K*C, LB) matmul per conv.
                "pertap" -> K accumulating (C, C) @ (C, LB) matmuls per conv.
    mm_dtype  : matmul operand dtype (f32 for small C, bf16 for large C).
    """
    NB = LB // Lseg

    def kernel(x_ref, attn_ref, w1_ref, b1_ref, w2_ref, b2_ref, pw_w_ref, pw_b_ref, o_ref):
        # Per-segment local time index, kept as a single (1, LB) row (broadcasts over channels).
        local_t = lax.broadcasted_iota(jnp.int32, (1, LB), 1)
        if NB > 1:
            local_t = local_t % Lseg

        mask_cache = {}

        def lane_mask(s):
            # (1, LB) f32 causal mask for shift s, built once per distinct shift.
            if s not in mask_cache:
                mask_cache[s] = (local_t >= s).astype(jnp.float32)
            return mask_cache[s]

        def delayed(x, s):
            """x delayed by s steps with causal zero fill, per length-Lseg lane segment."""
            if s == 0:
                return x
            if s >= Lseg:
                return None                      # this tap only ever sees the causal zero pad
            r = pltpu.roll(x, s, 1)              # XLU lane rotate: r[:, t] = x[:, t - s (mod LB)]
            return r * lane_mask(s)              # zero the wrapped head of every segment

        if conv_mode == "im2col":
            def conv(x, w2d, b, dil):
                # Taps are cast to mm_dtype BEFORE the concat -> half-size im2col slab.
                taps = []
                for k in range(K):
                    d = delayed(x, (K - 1 - k) * dil)
                    taps.append((jnp.zeros_like(x) if d is None else d).astype(mm_dtype))
                slab = jnp.concatenate(taps, axis=0)                         # (K*C, LB)
                return jnp.dot(w2d, slab, preferred_element_type=jnp.float32) + b
        else:
            def conv(x, w_taps, b, dil):
                # K accumulating per-tap MXU matmuls; dead taps (shift >= Lseg) are skipped.
                acc = None
                for k in range(K):
                    d = delayed(x, (K - 1 - k) * dil)
                    if d is None:
                        continue
                    t = jnp.dot(w_taps[k], d.astype(mm_dtype),
                                preferred_element_type=jnp.float32)
                    acc = t if acc is None else acc + t
                if acc is None:
                    acc = jnp.zeros((C, LB), jnp.float32)
                return acc + b

        # LaRed: x * softmax(fs_attention)   ((C, 1) broadcast over the lane axis).
        x = x_ref[...].astype(jnp.float32) * attn_ref[...]

        # DepthwiseNet: ALL TemporalBlocks fused; the activation never leaves VMEM.
        for lvl, dil in enumerate(dilations):
            h = jnp.maximum(conv(x, w1_ref[lvl], b1_ref[lvl], dil), 0.0)     # conv1+chomp+relu
            h = jnp.maximum(conv(h, w2_ref[lvl], b2_ref[lvl], dil), 0.0)     # conv2+chomp+relu
            x = jnp.maximum(h + x, 0.0)                                      # residual + relu

        # Pointwise Conv1d(C -> 1, 1): sublane reduce; the only HBM write is this (1, LB) row.
        y = jnp.sum(x * pw_w_ref[...], axis=0, keepdims=True) + pw_b_ref[...]
        o_ref[...] = y.astype(o_ref.dtype)

    return kernel


def lared_forward(x, params, *, dilation_c=2, bf16_min_channels=_BF16_MIN_CHANNELS):
    """LaRed.forward.  x: (N, C, L).  Returns (N, L, 1).

    params = (level_params, fs_attention, pw_w, pw_b) with
      level_params[i] = (w1 (C,C,K), b1 (C,), w2 (C,C,K), b2 (C,))  -- effective conv weights
      fs_attention (C, 1), pw_w (1, C, 1), pw_b (1,)
    """
    level_params, fs_attention, pw_w, pw_b = params
    N, C, L = x.shape
    num_levels = len(level_params)
    K = level_params[0][0].shape[-1]
    dilations = tuple(dilation_c ** i for i in range(num_levels))

    # softmax over the tiny (C, 1) attention parameter: host-side parameter transform.
    attn = jax.nn.softmax(fs_attention.astype(jnp.float32), axis=0)          # (C, 1)

    # Matmul recipe: f32 per-tap matmuls for small C (precision ~ PyTorch f32 convs), bf16 for
    # large C.  On v7x prefer per-tap matmuls (MRB accumulates in place, no im2col slab against
    # the 64 MiB VMEM); on v5e/v6e keep im2col so the MXU contraction dim stays at K*C.
    use_bf16 = C >= bf16_min_channels
    mm_dtype = jnp.bfloat16 if use_bf16 else jnp.float32
    conv_mode = "im2col" if (use_bf16 and not _is_v7x()) else "pertap"

    w1s = jnp.stack([w1 for (w1, _, _, _) in level_params]).astype(jnp.float32)  # (lv,C,C,K)
    w2s = jnp.stack([w2 for (_, _, w2, _) in level_params]).astype(jnp.float32)
    b1s = jnp.stack([b1 for (_, b1, _, _) in level_params]).astype(jnp.float32)[..., None]
    b2s = jnp.stack([b2 for (_, _, _, b2) in level_params]).astype(jnp.float32)[..., None]
    if conv_mode == "im2col":
        # (levels, C_out, K*C_in), columns ordered [tap-major, in-ch-minor] to match the slab.
        w1p = jnp.transpose(w1s, (0, 1, 3, 2)).reshape(num_levels, C, K * C).astype(mm_dtype)
        w2p = jnp.transpose(w2s, (0, 1, 3, 2)).reshape(num_levels, C, K * C).astype(mm_dtype)
    else:
        # (levels, K, C_out, C_in) per-tap weights.
        w1p = jnp.transpose(w1s, (0, 3, 1, 2)).astype(mm_dtype)
        w2p = jnp.transpose(w2s, (0, 3, 1, 2)).astype(mm_dtype)

    pw_wc = pw_w.reshape(C, 1).astype(jnp.float32)     # Conv1d(C,1,1) weight (1,C,1) -> (C,1)
    pw_bc = pw_b.reshape(1, 1).astype(jnp.float32)

    packed, nb, Lp = _pick_packing(N, L)
    Lseg = L if packed else Lp
    LB = nb * Lseg

    kernel = _make_lared_kernel(C=C, Lseg=Lseg, LB=LB, K=K, dilations=dilations,
                                conv_mode=conv_mode, mm_dtype=mm_dtype)

    if packed:
        # Pack nb sequences per block on the lane axis: (N, C, L) -> (C, N*L).
        operand = jnp.transpose(x, (1, 0, 2)).reshape(C, N * L)
        grid = (N // nb,)
        x_spec = pl.BlockSpec((C, LB), lambda g: (0, g))
        out_shape = jax.ShapeDtypeStruct((1, N * L), x.dtype)
        out_spec = pl.BlockSpec((1, LB), lambda g: (0, g))
    else:
        # One sequence per block, read in place (lane-pad the time axis only if needed).
        operand = x if Lp == L else jnp.pad(x, ((0, 0), (0, 0), (0, Lp - L)))
        grid = (N,)
        x_spec = pl.BlockSpec((None, C, Lp), lambda g: (g, 0, 0))
        out_shape = jax.ShapeDtypeStruct((N, 1, Lp), x.dtype)
        out_spec = pl.BlockSpec((None, 1, Lp), lambda g: (g, 0, 0))

    # Scoped-VMEM budget from the actual residency (double-buffered in/out + live activation
    # slabs + im2col slab + resident weights) with headroom; never below the platform defaults.
    mm_bytes = jnp.dtype(mm_dtype).itemsize
    weight_bytes = 2 * num_levels * (C * K * C * mm_bytes + C * 4)
    slab_bytes = (K * C * LB * mm_bytes) * (2 if conv_mode == "im2col" else 1)
    est = 2 * (C * LB * 4) + 2 * (LB * 4) + 5 * (C * LB * 4) + slab_bytes + weight_bytes
    vmem_limit = int(min(max(2 * est, 32 << 20), 96 << 20))

    yt = pl.pallas_call(
        kernel,
        out_shape=out_shape,
        grid=grid,
        in_specs=[
            x_spec,                                   # activation block
            _full_spec((C, 1)),                       # softmax(fs_attention)
            _full_spec(tuple(w1p.shape)),             # conv1 weights, all levels
            _full_spec((num_levels, C, 1)),           # conv1 biases
            _full_spec(tuple(w2p.shape)),             # conv2 weights, all levels
            _full_spec((num_levels, C, 1)),           # conv2 biases
            _full_spec((C, 1)),                       # pointwise weight
            _full_spec((1, 1)),                       # pointwise bias
        ],
        out_specs=out_spec,
        compiler_params=pltpu.CompilerParams(
            dimension_semantics=("parallel",),
            vmem_limit_bytes=vmem_limit),
    )(operand, attn, w1p, b1s, w2p, b2s, pw_wc, pw_bc)

    # LaRed returns pointwise(...).transpose(1, 2) == (N, L, 1).
    if packed:
        return yt.reshape(N, L, 1)
    return yt.reshape(N, Lp, 1)[:, :L, :]             # metadata reshape + drop the padded tail


# ---------------- deterministic parameter init (mirrors the PyTorch module shapes) -----------
def init_lared_params(key, input_size, num_levels, kernel_size):
    C, K = input_size, kernel_size
    w_std = float(np.sqrt(2.0 / (2 * C * K)))      # xavier_normal_ on a (C, C, K) Conv1d weight
    b_bound = float(1.0 / np.sqrt(C * K))          # PyTorch Conv1d default bias init
    levels = []
    for _ in range(num_levels):
        key, k1, k2, k3, k4 = jax.random.split(key, 5)
        w1 = jax.random.normal(k1, (C, C, K), jnp.float32) * w_std
        b1 = jax.random.uniform(k2, (C,), jnp.float32, -b_bound, b_bound)
        w2 = jax.random.normal(k3, (C, C, K), jnp.float32) * w_std
        b2 = jax.random.uniform(k4, (C,), jnp.float32, -b_bound, b_bound)
        levels.append((w1, b1, w2, b2))
    key, kpw, kpb = jax.random.split(key, 3)
    pw_bound = float(1.0 / np.sqrt(C))
    pw_w = jax.random.uniform(kpw, (1, C, 1), jnp.float32, -pw_bound, pw_bound)
    pw_b = jax.random.uniform(kpb, (1,), jnp.float32, -pw_bound, pw_bound)
    fs_attention = jnp.ones((C, 1), jnp.float32)   # LaRed: attention param initialized to ones
    return levels, fs_attention, pw_w, pw_b


# ---------------- pure-JAX reference (for correctness check) ---------------------------------
def _causal_conv_ref(x, w, b, dilation):
    K = w.shape[-1]
    P = (K - 1) * dilation
    y = lax.conv_general_dilated(
        x, w, window_strides=(1,), padding=[(P, P)], rhs_dilation=(dilation,),
        dimension_numbers=("NCH", "OIH", "NCH"), precision=lax.Precision.HIGHEST)
    return (y + b[None, :, None])[:, :, : x.shape[2]]


def lared_ref(x, params, dilation_c=2):
    level_params, fs_attention, pw_w, pw_b = params
    attn = jax.nn.softmax(fs_attention, axis=0)            # (C, 1)
    h = x * attn                                            # broadcast over batch and time
    for i, (w1, b1, w2, b2) in enumerate(level_params):
        d = dilation_c ** i
        a = jax.nn.relu(_causal_conv_ref(h, w1, b1, d))
        a = jax.nn.relu(_causal_conv_ref(a, w2, b2, d))
        h = jax.nn.relu(a + h)
    y = jnp.einsum("ncl,oc->nol", h, pw_w[:, :, 0],
                   precision=lax.Precision.HIGHEST) + pw_b[None, :, None]
    return jnp.transpose(y, (0, 2, 1))                      # (N, L, 1)


if __name__ == "__main__":
    key = jax.random.PRNGKey(0)
    num_levels, kernel_size, dilation_c = 2, 2, 2

    # 1) small config: f32 per-tap MXU path, lane-padded time (L < 128), grid over batch -------
    N, C, L = 2, 8, 16
    kx, kp, key = jax.random.split(key, 3)
    x = jax.random.normal(kx, (N, C, L), jnp.float32)
    params = init_lared_params(kp, C, num_levels, kernel_size)
    out = jax.block_until_ready(lared_forward(x, params, dilation_c=dilation_c))
    ref = lared_ref(x, params, dilation_c=dilation_c)
    # f32 operands + f32 accumulation; tolerance kept loose only for MXU default-precision.
    np.testing.assert_allclose(np.asarray(out), np.asarray(ref), rtol=2e-2, atol=2e-2)

    # 2) packed config: batch packed onto the lane axis (per-segment causal masking) -----------
    N, C, L = 4, 16, 64
    kx, kp, key = jax.random.split(key, 3)
    x = jax.random.normal(kx, (N, C, L), jnp.float32)
    params = init_lared_params(kp, C, num_levels, kernel_size)
    out = jax.block_until_ready(lared_forward(x, params, dilation_c=dilation_c))
    ref = lared_ref(x, params, dilation_c=dilation_c)
    np.testing.assert_allclose(np.asarray(out), np.asarray(ref), rtol=2e-2, atol=2e-2)

    # 3) large config: bf16 im2col MXU path (per-tap on v7x), in-place 3-D read, grid = 2 ------
    N, C, L = 2, 128, 256
    kx, kp, key = jax.random.split(key, 3)
    x = jax.random.normal(kx, (N, C, L), jnp.float32)
    params = init_lared_params(kp, C, num_levels, kernel_size)
    out = jax.block_until_ready(lared_forward(x, params, dilation_c=dilation_c))
    ref = lared_ref(x, params, dilation_c=dilation_c)
    np.testing.assert_allclose(np.asarray(out), np.asarray(ref), rtol=5e-2, atol=2e-2)

    print("KERNEL_OK")
</pallas_src>

<mosaic_0001>
module attributes {stable_mosaic.version = 11 : i64} {
  func.func @kernel(%arg0: i32, %arg1: memref<1x8x128xf32, #tpu.memory_space<vmem>>, %arg2: memref<8x1xf32, #tpu.memory_space<vmem>>, %arg3: memref<2x2x8x8xf32, #tpu.memory_space<vmem>>, %arg4: memref<2x8x1xf32, #tpu.memory_space<vmem>>, %arg5: memref<2x2x8x8xf32, #tpu.memory_space<vmem>>, %arg6: memref<2x8x1xf32, #tpu.memory_space<vmem>>, %arg7: memref<8x1xf32, #tpu.memory_space<vmem>>, %arg8: memref<1x1xf32, #tpu.memory_space<vmem>>, %arg9: memref<1x1x128xf32, #tpu.memory_space<vmem>>) attributes {dimension_semantics = [#tpu.dimension_semantics<parallel>], iteration_bounds = array<i64: 2>, scalar_prefetch = 0 : i64, scratch_operands = 0 : i64, tpu.core_type = #tpu.core_type<tc>, window_params = [{transform_indices = @transform_0, window_bounds = array<i64: 1, 8, 128>}, {pipeline_mode = #tpu.pipeline_mode<synchronous>, transform_indices = @transform_1, window_bounds = array<i64: 8, 1>}, {pipeline_mode = #tpu.pipeline_mode<synchronous>, transform_indices = @transform_2, window_bounds = array<i64: 2, 2, 8, 8>}, {pipeline_mode = #tpu.pipeline_mode<synchronous>, transform_indices = @transform_3, window_bounds = array<i64: 2, 8, 1>}, {pipeline_mode = #tpu.pipeline_mode<synchronous>, transform_indices = @transform_4, window_bounds = array<i64: 2, 2, 8, 8>}, {pipeline_mode = #tpu.pipeline_mode<synchronous>, transform_indices = @transform_5, window_bounds = array<i64: 2, 8, 1>}, {pipeline_mode = #tpu.pipeline_mode<synchronous>, transform_indices = @transform_6, window_bounds = array<i64: 8, 1>}, {pipeline_mode = #tpu.pipeline_mode<synchronous>, transform_indices = @transform_7, window_bounds = array<i64: 1, 1>}, {transform_indices = @transform_8, window_bounds = array<i64: 1, 1, 128>}]} {
    %0 = tpu.iota {dimensions = array<i32: 1>} : vector<1x128xi32>
    %c0 = arith.constant 0 : index
    %c0_0 = arith.constant 0 : index
    %c0_1 = arith.constant 0 : index
    %1 = vector.load %arg1[%c0, %c0_0, %c0_1] : memref<1x8x128xf32, #tpu.memory_space<vmem>>, vector<1x8x128xf32>
    %2 = vector.shape_cast %1 : vector<1x8x128xf32> to vector<8x128xf32>
    %c0_2 = arith.constant 0 : index
    %c0_3 = arith.constant 0 : index
    %3 = vector.load %arg2[%c0_2, %c0_3] : memref<8x1xf32, #tpu.memory_space<vmem>>, vector<8x1xf32>
    %4 = vector.broadcast %3 : vector<8x1xf32> to vector<8x128xf32>
    %5 = arith.mulf %2, %4 : vector<8x128xf32>
    %c0_4 = arith.constant 0 : index
    %c0_5 = arith.constant 0 : index
    %c0_6 = arith.constant 0 : index
    %c0_7 = arith.constant 0 : index
    %6 = vector.load %arg3[%c0_4, %c0_5, %c0_6, %c0_7] : memref<2x2x8x8xf32, #tpu.memory_space<vmem>>, vector<1x2x8x8xf32>
    %7 = vector.shape_cast %6 : vector<1x2x8x8xf32> to vector<2x8x8xf32>
    %c0_8 = arith.constant 0 : index
    %c0_9 = arith.constant 0 : index
    %c0_10 = arith.constant 0 : index
    %8 = vector.load %arg4[%c0_8, %c0_9, %c0_10] : memref<2x8x1xf32, #tpu.memory_space<vmem>>, vector<1x8x1xf32>
    %9 = vector.shape_cast %8 : vector<1x8x1xf32> to vector<8x1xf32>
    %c1_i32 = arith.constant 1 : i32
    %10 = tpu.dynamic_rotate %5 by %c1_i32 dim 1 : vector<8x128xf32>, i32 -> vector<8x128xf32>
    %c1_i32_11 = arith.constant 1 : i32
    %11 = vector.broadcast %c1_i32_11 : i32 to vector<1x128xi32>
    %12 = arith.cmpi sge, %0, %11 : vector<1x128xi32>
    %13 = arith.extui %12 : vector<1x128xi1> to vector<1x128xi32>
    %14 = arith.sitofp %13 : vector<1x128xi32> to vector<1x128xf32>
    %15 = vector.broadcast %14 : vector<1x128xf32> to vector<8x128xf32>
    %16 = arith.mulf %10, %15 : vector<8x128xf32>
    %17 = vector.extract_strided_slice %7 {offsets = [0, 0, 0], sizes = [1, 8, 8], strides = [1, 1, 1]} : vector<2x8x8xf32> to vector<1x8x8xf32>
    %18 = vector.shape_cast %17 : vector<1x8x8xf32> to vector<8x8xf32>
    %cst = arith.constant dense<0.000000e+00> : vector<8x128xf32>
    %19 = tpu.matmul %18, %16, %cst {dimension_numbers = #tpu.dot_dimension_numbers<[1], [0], [0], [1], [0, 0, 1, 1], [], []>} : vector<8x8xf32>, vector<8x128xf32>, vector<8x128xf32> -> vector<8x128xf32>
    %20 = vector.extract_strided_slice %7 {offsets = [1, 0, 0], sizes = [1, 8, 8], strides = [1, 1, 1]} : vector<2x8x8xf32> to vector<1x8x8xf32>
    %21 = vector.shape_cast %20 : vector<1x8x8xf32> to vector<8x8xf32>
    %cst_12 = arith.constant dense<0.000000e+00> : vector<8x128xf32>
    %22 = tpu.matmul %21, %5, %cst_12 {dimension_numbers = #tpu.dot_dimension_numbers<[1], [0], [0], [1], [0, 0, 1, 1], [], []>} : vector<8x8xf32>, vector<8x128xf32>, vector<8x128xf32> -> vector<8x128xf32>
    %23 = arith.addf %19, %22 : vector<8x128xf32>
    %24 = vector.broadcast %9 : vector<8x1xf32> to vector<8x128xf32>
    %25 = arith.addf %23, %24 : vector<8x128xf32>
    %cst_13 = arith.constant 0.000000e+00 : f32
    %26 = vector.broadcast %cst_13 : f32 to vector<8x128xf32>
    %27 = arith.maximumf %25, %26 : vector<8x128xf32>
    %c0_14 = arith.constant 0 : index
    %c0_15 = arith.constant 0 : index
    %c0_16 = arith.constant 0 : index
    %c0_17 = arith.constant 0 : index
    %28 = vector.load %arg5[%c0_14, %c0_15, %c0_16, %c0_17] : memref<2x2x8x8xf32, #tpu.memory_space<vmem>>, vector<1x2x8x8xf32>
    %29 = vector.shape_cast %28 : vector<1x2x8x8xf32> to vector<2x8x8xf32>
    %c0_18 = arith.constant 0 : index
    %c0_19 = arith.constant 0 : index
    %c0_20 = arith.constant 0 : index
    %30 = vector.load %arg6[%c0_18, %c0_19, %c0_20] : memref<2x8x1xf32, #tpu.memory_space<vmem>>, vector<1x8x1xf32>
    %31 = vector.shape_cast %30 : vector<1x8x1xf32> to vector<8x1xf32>
    %c1_i32_21 = arith.constant 1 : i32
    %32 = tpu.dynamic_rotate %27 by %c1_i32_21 dim 1 : vector<8x128xf32>, i32 -> vector<8x128xf32>
    %33 = vector.broadcast %14 : vector<1x128xf32> to vector<8x128xf32>
    %34 = arith.mulf %32, %33 : vector<8x128xf32>
    %35 = vector.extract_strided_slice %29 {offsets = [0, 0, 0], sizes = [1, 8, 8], strides = [1, 1, 1]} : vector<2x8x8xf32> to vector<1x8x8xf32>
    %36 = vector.shape_cast %35 : vector<1x8x8xf32> to vector<8x8xf32>
    %cst_22 = arith.constant dense<0.000000e+00> : vector<8x128xf32>
    %37 = tpu.matmul %36, %34, %cst_22 {dimension_numbers = #tpu.dot_dimension_numbers<[1], [0], [0], [1], [0, 0, 1, 1], [], []>} : vector<8x8xf32>, vector<8x128xf32>, vector<8x128xf32> -> vector<8x128xf32>
    %38 = vector.extract_strided_slice %29 {offsets = [1, 0, 0], sizes = [1, 8, 8], strides = [1, 1, 1]} : vector<2x8x8xf32> to vector<1x8x8xf32>
    %39 = vector.shape_cast %38 : vector<1x8x8xf32> to vector<8x8xf32>
    %cst_23 = arith.constant dense<0.000000e+00> : vector<8x128xf32>
    %40 = tpu.matmul %39, %27, %cst_23 {dimension_numbers = #tpu.dot_dimension_numbers<[1], [0], [0], [1], [0, 0, 1, 1], [], []>} : vector<8x8xf32>, vector<8x128xf32>, vector<8x128xf32> -> vector<8x128xf32>
    %41 = arith.addf %37, %40 : vector<8x128xf32>
    %42 = vector.broadcast %31 : vector<8x1xf32> to vector<8x128xf32>
    %43 = arith.addf %41, %42 : vector<8x128xf32>
    %cst_24 = arith.constant 0.000000e+00 : f32
    %44 = vector.broadcast %cst_24 : f32 to vector<8x128xf32>
    %45 = arith.maximumf %43, %44 : vector<8x128xf32>
    %46 = arith.addf %45, %5 : vector<8x128xf32>
    %cst_25 = arith.constant 0.000000e+00 : f32
    %47 = vector.broadcast %cst_25 : f32 to vector<8x128xf32>
    %48 = arith.maximumf %46, %47 : vector<8x128xf32>
    %c1 = arith.constant 1 : index
    %c0_26 = arith.constant 0 : index
    %c0_27 = arith.constant 0 : index
    %c0_28 = arith.constant 0 : index
    %49 = vector.load %arg3[%c1, %c0_26, %c0_27, %c0_28] : memref<2x2x8x8xf32, #tpu.memory_space<vmem>>, vector<1x2x8x8xf32>
    %50 = vector.shape_cast %49 : vector<1x2x8x8xf32> to vector<2x8x8xf32>
    %c1_29 = arith.constant 1 : index
    %c0_30 = arith.constant 0 : index
    %c0_31 = arith.constant 0 : index
    %51 = vector.load %arg4[%c1_29, %c0_30, %c0_31] : memref<2x8x1xf32, #tpu.memory_space<vmem>>, vector<1x8x1xf32>
    %52 = vector.shape_cast %51 : vector<1x8x1xf32> to vector<8x1xf32>
    %c2_i32 = arith.constant 2 : i32
    %53 = tpu.dynamic_rotate %48 by %c2_i32 dim 1 : vector<8x128xf32>, i32 -> vector<8x128xf32>
    %c2_i32_32 = arith.constant 2 : i32
    %54 = vector.broadcast %c2_i32_32 : i32 to vector<1x128xi32>
    %55 = arith.cmpi sge, %0, %54 : vector<1x128xi32>
    %56 = arith.extui %55 : vector<1x128xi1> to vector<1x128xi32>
    %57 = arith.sitofp %56 : vector<1x128xi32> to vector<1x128xf32>
    %58 = vector.broadcast %57 : vector<1x128xf32> to vector<8x128xf32>
    %59 = arith.mulf %53, %58 : vector<8x128xf32>
    %60 = vector.extract_strided_slice %50 {offsets = [0, 0, 0], sizes = [1, 8, 8], strides = [1, 1, 1]} : vector<2x8x8xf32> to vector<1x8x8xf32>
    %61 = vector.shape_cast %60 : vector<1x8x8xf32> to vector<8x8xf32>
    %cst_33 = arith.constant dense<0.000000e+00> : vector<8x128xf32>
    %62 = tpu.matmul %61, %59, %cst_33 {dimension_numbers = #tpu.dot_dimension_numbers<[1], [0], [0], [1], [0, 0, 1, 1], [], []>} : vector<8x8xf32>, vector<8x128xf32>, vector<8x128xf32> -> vector<8x128xf32>
    %63 = vector.extract_strided_slice %50 {offsets = [1, 0, 0], sizes = [1, 8, 8], strides = [1, 1, 1]} : vector<2x8x8xf32> to vector<1x8x8xf32>
    %64 = vector.shape_cast %63 : vector<1x8x8xf32> to vector<8x8xf32>
    %cst_34 = arith.constant dense<0.000000e+00> : vector<8x128xf32>
    %65 = tpu.matmul %64, %48, %cst_34 {dimension_numbers = #tpu.dot_dimension_numbers<[1], [0], [0], [1], [0, 0, 1, 1], [], []>} : vector<8x8xf32>, vector<8x128xf32>, vector<8x128xf32> -> vector<8x128xf32>
    %66 = arith.addf %62, %65 : vector<8x128xf32>
    %67 = vector.broadcast %52 : vector<8x1xf32> to vector<8x128xf32>
    %68 = arith.addf %66, %67 : vector<8x128xf32>
    %cst_35 = arith.constant 0.000000e+00 : f32
    %69 = vector.broadcast %cst_35 : f32 to vector<8x128xf32>
    %70 = arith.maximumf %68, %69 : vector<8x128xf32>
    %c1_36 = arith.constant 1 : index
    %c0_37 = arith.constant 0 : index
    %c0_38 = arith.constant 0 : index
    %c0_39 = arith.constant 0 : index
    %71 = vector.load %arg5[%c1_36, %c0_37, %c0_38, %c0_39] : memref<2x2x8x8xf32, #tpu.memory_space<vmem>>, vector<1x2x8x8xf32>
    %72 = vector.shape_cast %71 : vector<1x2x8x8xf32> to vector<2x8x8xf32>
    %c1_40 = arith.constant 1 : index
    %c0_41 = arith.constant 0 : index
    %c0_42 = arith.constant 0 : index
    %73 = vector.load %arg6[%c1_40, %c0_41, %c0_42] : memref<2x8x1xf32, #tpu.memory_space<vmem>>, vector<1x8x1xf32>
    %74 = vector.shape_cast %73 : vector<1x8x1xf32> to vector<8x1xf32>
    %c2_i32_43 = arith.constant 2 : i32
    %75 = tpu.dynamic_rotate %70 by %c2_i32_43 dim 1 : vector<8x128xf32>, i32 -> vector<8x128xf32>
    %76 = vector.broadcast %57 : vector<1x128xf32> to vector<8x128xf32>
    %77 = arith.mulf %75, %76 : vector<8x128xf32>
    %78 = vector.extract_strided_slice %72 {offsets = [0, 0, 0], sizes = [1, 8, 8], strides = [1, 1, 1]} : vector<2x8x8xf32> to vector<1x8x8xf32>
    %79 = vector.shape_cast %78 : vector<1x8x8xf32> to vector<8x8xf32>
    %cst_44 = arith.constant dense<0.000000e+00> : vector<8x128xf32>
    %80 = tpu.matmul %79, %77, %cst_44 {dimension_numbers = #tpu.dot_dimension_numbers<[1], [0], [0], [1], [0, 0, 1, 1], [], []>} : vector<8x8xf32>, vector<8x128xf32>, vector<8x128xf32> -> vector<8x128xf32>
    %81 = vector.extract_strided_slice %72 {offsets = [1, 0, 0], sizes = [1, 8, 8], strides = [1, 1, 1]} : vector<2x8x8xf32> to vector<1x8x8xf32>
    %82 = vector.shape_cast %81 : vector<1x8x8xf32> to vector<8x8xf32>
    %cst_45 = arith.constant dense<0.000000e+00> : vector<8x128xf32>
    %83 = tpu.matmul %82, %70, %cst_45 {dimension_numbers = #tpu.dot_dimension_numbers<[1], [0], [0], [1], [0, 0, 1, 1], [], []>} : vector<8x8xf32>, vector<8x128xf32>, vector<8x128xf32> -> vector<8x128xf32>
    %84 = arith.addf %80, %83 : vector<8x128xf32>
    %85 = vector.broadcast %74 : vector<8x1xf32> to vector<8x128xf32>
    %86 = arith.addf %84, %85 : vector<8x128xf32>
    %cst_46 = arith.constant 0.000000e+00 : f32
    %87 = vector.broadcast %cst_46 : f32 to vector<8x128xf32>
    %88 = arith.maximumf %86, %87 : vector<8x128xf32>
    %89 = arith.addf %88, %48 : vector<8x128xf32>
    %cst_47 = arith.constant 0.000000e+00 : f32
    %90 = vector.broadcast %cst_47 : f32 to vector<8x128xf32>
    %91 = arith.maximumf %89, %90 : vector<8x128xf32>
    %c0_48 = arith.constant 0 : index
    %c0_49 = arith.constant 0 : index
    %92 = vector.load %arg7[%c0_48, %c0_49] : memref<8x1xf32, #tpu.memory_space<vmem>>, vector<8x1xf32>
    %93 = vector.broadcast %92 : vector<8x1xf32> to vector<8x128xf32>
    %94 = arith.mulf %91, %93 : vector<8x128xf32>
    %cst_50 = arith.constant dense<0.000000e+00> : vector<128xf32>
    %95 = vector.multi_reduction <add>, %94, %cst_50 [0] : vector<8x128xf32> to vector<128xf32>
    %96 = vector.shape_cast %95 : vector<128xf32> to vector<1x128xf32>
    %c0_51 = arith.constant 0 : index
    %c0_52 = arith.constant 0 : index
    %97 = vector.load %arg8[%c0_51, %c0_52] : memref<1x1xf32, #tpu.memory_space<vmem>>, vector<1x1xf32>
    %98 = vector.broadcast %97 : vector<1x1xf32> to vector<1x128xf32>
    %99 = arith.addf %96, %98 : vector<1x128xf32>
    %c0_53 = arith.constant 0 : index
    %c0_54 = arith.constant 0 : index
    %c0_55 = arith.constant 0 : index
    %100 = vector.load %arg9[%c0_53, %c0_54, %c0_55] : memref<1x1x128xf32, #tpu.memory_space<vmem>>, vector<1x1x128xf32>
    %101 = vector.shape_cast %100 : vector<1x1x128xf32> to vector<1x128xf32>
    %102 = vector.shape_cast %99 : vector<1x128xf32> to vector<1x1x128xf32>
    tpu.vector_store %arg9[%c0_53, %c0_54, %c0_55], %102 {strides = array<i32>} : memref<1x1x128xf32, #tpu.memory_space<vmem>>, vector<1x1x128xf32>,
    return
  }
  func.func @transform_0(%arg0: i32) -> (i32, i32, i32) {
    %c0_i32 = arith.constant 0 : i32
    %c0_i32_0 = arith.constant 0 : i32
    %c0_i32_1 = arith.constant 0 : i32
    return %arg0, %c0_i32, %c0_i32_0 : i32, i32, i32
  }
  func.func @transform_1(%arg0: i32) -> (i32, i32) {
    %c0_i32 = arith.constant 0 : i32
    %c0_i32_0 = arith.constant 0 : i32
    %c0_i32_1 = arith.constant 0 : i32
    return %c0_i32, %c0_i32_0 : i32, i32
  }
  func.func @transform_2(%arg0: i32) -> (i32, i32, i32, i32) {
    %c0_i32 = arith.constant 0 : i32
    %c0_i32_0 = arith.constant 0 : i32
    %c0_i32_1 = arith.constant 0 : i32
    %c0_i32_2 = arith.constant 0 : i32
    %c0_i32_3 = arith.constant 0 : i32
    return %c0_i32, %c0_i32_0, %c0_i32_1, %c0_i32_2 : i32, i32, i32, i32
  }
  func.func @transform_3(%arg0: i32) -> (i32, i32, i32) {
    %c0_i32 = arith.constant 0 : i32
    %c0_i32_0 = arith.constant 0 : i32
    %c0_i32_1 = arith.constant 0 : i32
    %c0_i32_2 = arith.constant 0 : i32
    return %c0_i32, %c0_i32_0, %c0_i32_1 : i32, i32, i32
  }
  func.func @transform_4(%arg0: i32) -> (i32, i32, i32, i32) {
    %c0_i32 = arith.constant 0 : i32
    %c0_i32_0 = arith.constant 0 : i32
    %c0_i32_1 = arith.constant 0 : i32
    %c0_i32_2 = arith.constant 0 : i32
    %c0_i32_3 = arith.constant 0 : i32
    return %c0_i32, %c0_i32_0, %c0_i32_1, %c0_i32_2 : i32, i32, i32, i32
  }
  func.func @transform_5(%arg0: i32) -> (i32, i32, i32) {
    %c0_i32 = arith.constant 0 : i32
    %c0_i32_0 = arith.constant 0 : i32
    %c0_i32_1 = arith.constant 0 : i32
    %c0_i32_2 = arith.constant 0 : i32
    return %c0_i32, %c0_i32_0, %c0_i32_1 : i32, i32, i32
  }
  func.func @transform_6(%arg0: i32) -> (i32, i32) {
    %c0_i32 = arith.constant 0 : i32
    %c0_i32_0 = arith.constant 0 : i32
    %c0_i32_1 = arith.constant 0 : i32
    return %c0_i32, %c0_i32_0 : i32, i32
  }
  func.func @transform_7(%arg0: i32) -> (i32, i32) {
    %c0_i32 = arith.constant 0 : i32
    %c0_i32_0 = arith.constant 0 : i32
    %c0_i32_1 = arith.constant 0 : i32
    return %c0_i32, %c0_i32_0 : i32, i32
  }
  func.func @transform_8(%arg0: i32) -> (i32, i32, i32) {
    %c0_i32 = arith.constant 0 : i32
    %c0_i32_0 = arith.constant 0 : i32
    %c0_i32_1 = arith.constant 0 : i32
    return %arg0, %c0_i32, %c0_i32_0 : i32, i32, i32
  }
}

</mosaic_0001>

<bundles_post_ra>
// kernel: tpu_custom_call.1
= control target key start
LH: loop header
LB: loop body
LE: loop exit
PB: predicated region body
PF: predicated region fallthrough
CT: control target
= control target key end

     0   :  { %s1166_s0 = inlined_call_operand.hbm [shape: f32[2,8,128], index: 0, kind: input, shape index: {}]   ;;  %s1167_s1 = inlined_call_operand.vmem [shape: f32[8,1], index: 1, kind: input, shape index: {}]   ;;  %s1168_s2 = inlined_call_operand.vmem [shape: f32[2,2,8,8], index: 2, kind: input, shape index: {}]   ;;  %s1169_s3 = inlined_call_operand.vmem [shape: f32[2,8,1], index: 3, kind: input, shape index: {}]   ;;  %s1170_s4 = inlined_call_operand.hbm [shape: f32[2,2,8,8], index: 4, kind: input, shape index: {}]   ;;  %s1171_s5 = inlined_call_operand.vmem [shape: f32[2,8,1], index: 5, kind: input, shape index: {}]   ;;  %s1172_s6 = inlined_call_operand.vmem [shape: f32[8,1], index: 6, kind: input, shape index: {}]   ;;  %s1173_s7 = inlined_call_operand.<no memory space> [shape: f32[1,1], index: 7, kind: input, shape index: {}]   ;;  %s1174_s8 = inlined_call_operand.hbm [shape: f32[2,1,128], index: 8, kind: output, shape index: {}]  }
   0x1   :  { %1175 = sst [smem:[#allocation12_spill]] %s1170_s4  ;;  %v13_v0 = vstv %s1173_s7 }
   0x2   :  { %14 = vst [vmem:[#allocation2] sm:$0x1] %v13_v0 }
   0x3   :  { %15 = vsyncpa [#allocation4], 0 }
   0x4   :  { %17 = vsyncpa [#allocation4 + $0x1], 0 }
   0x5   :  { %18 = vsyncpa [#allocation7], 0 }
   0x6   :  { %19 = vsyncpa [#allocation5], 0 }
   0x7   :  { %21 = vsyncpa [#allocation5 + $0x1], 0  ;;  %s991_s29 = smov 0   ;;  %s993_s30 = smov 0  }
   0x8   :  { %s995_s9 = smov 0   ;;  %s997_s10 = smov 0  }
   0x9 LB: > { %s1176_s4 = sld [smem:[#allocation12_spill]]  ;;  %s1015_s13 = sadd.s32 4294967295, %s934_s10   ;;  %s934_s10 = sphi %s997_s10, %s1186_s10   ;;  %s930_s9 = sphi %s995_s9, %s1185_s9   ;;  %s926_s30 = sphi %s993_s30, %s1184_s30   ;;  %s922_s29 = sphi %s991_s29, %s1183_s29  }
   0xa   : > { %p714_p0 = scmp.ge.s32.totalorder %s934_s10, 1  ;;  %p48_p1 = scmp.eq.s32.totalorder %s1015_s13, 0 }
   0xb   : > { %p231_p2 = scmp.lt.s32.totalorder %s934_s10, 3  ;;  %s936_s15 = smov [#allocation6]  }
   0xc   : > { %s253_s16 = sshll.u32 %s936_s15, 4  ;;  %s937_s17 = smov 128   ;;  %s254_s16 = int_to_ptr.vmem [resolvable:$true] %s253_s16 }
   0xd   : > { %p1020_p3 = pnand %p714_p0, %p231_p2  ;;  %s938_s18 = smov 8  }
   0xe   : > { %s713_s19 = sadd.s32 4294967294, %s934_s10   ;;  %s1031_s20 = sadd.s32 1, %s934_s10  }
   0xf   : > { %s251_s12 = sshll.u32 %s1176_s4, 4  ;;  %p746_p4 = pneg %p1020_p3  ;;  %s252_s12 = int_to_ptr.hbm [resolvable:$true] %s251_s12 }
  0x10   : > { %s34_s21 = sadd.s32 1, %s930_s9  ;;  %s31_s22 = ssub.s32 %s934_s10, %s1031_s20 }
  0x11   : > { %p747_p6 = pnand %p746_p4, %p48_p1  ;;  %p41_p7 = scmp.ne.s32.totalorder %s930_s9, %s926_s30 }
  0x12   : > { %p32_p8 = scmp.eq.s32.totalorder %s31_s22, 0  ;;  %p42_p9 = scmp.eq.s32.totalorder %s934_s10, 0 }
  0x13   : > { %749 = dma.hbm_to_vmem [thread:$0]  (!%p747_p6), %s252_s12, 512, %s254_s16, [#allocation7], %s937_s17, %s937_s17, %s938_s18  }
  0x14   : > { %p47_p10 = scmp.ne.s32.totalorder %s926_s30, %s922_s29  ;;  %p218_p11 = scmp.eq.s32.totalorder %s1015_s13, 1 }
  0x15   : > { %s1043_s23 = scalar_select %p32_p8, %s930_s9, %s34_s21  }
  0x16   : > { %p1047_p12 = por %p48_p1, %p47_p10  ;;  %p1051_p13 = por %p218_p11, %p41_p7 }
  0x17   : > { %p224_p0 = scmp.eq.s32.totalorder %s713_s19, 1  ;;  %p43_p2 = por %p42_p9, %p41_p7 }
  0x18   : > { %s276_s26 = sand.u32 1, %s930_s9   ;;  %p759_p6 = scmp.lt.s32.totalorder %s934_s10, 2 }
  0x19   : > { %p1056_p4 = por %p224_p0, %p47_p10  ;;  %s717_s28 = sshll.u32 %s276_s26, 3 }
  0x1a   : > { %s718_s7 = sshll.u32 %s934_s10, 3  ;;  %s280_s17 = scalar_lea.vmem [#allocation3], %s717_s28 }
  0x1b   : > { %s284_s15 = scalar_lea.hbm %s1166_s0, %s718_s7  ;;  %s288_s18 = sshll.u32 %s280_s17, 4  ;;  %s289_s18 = int_to_ptr.vmem [resolvable:$true] %s288_s18 }
  0x1c   : > { %s286_s16 = sshll.u32 %s284_s15, 4  ;;  %p1065_p8 = pnand %p759_p6, %p43_p2  ;;  %s287_s16 = int_to_ptr.hbm [resolvable:$true] %s286_s16 }
  0x1d   : > { %s277_s21 = scalar_lea.sflag [#allocation4], %s276_s26  ;;  %s834_s22 = sshra.s32 %s287_s16, 4  ;;  %s835_s22 = int_to_ptr.hbm [resolvable:$true] %s834_s22 }
  0x1e   : > { %s836_s4 = scalar_lea.hbm %s835_s22, 8  ;;  %p838_p9 = pneg %p1065_p8 }
  0x1f   : > { %p837_p7 = scmp.ne.s32.totalorder %s835_s22, %s836_s4  ;;  %s841_s28 = scalar_lea.hbm %s1166_s0, 16 }
  0x20   : > { %p842_p0 = scmp.lt.s32.totalorder %s835_s22, %s1166_s0  ;;  %p843_p2 = scmp.lt.s32.totalorder %s841_s28, %s836_s4 }
  0x21   : > { %p839_p10 = pnand %p838_p9, %p837_p7 }
  0x22   : > { %p844_p6 = por %p843_p2, %p842_p0 }
  0x23   : > { %p840_p11 = pneg %p839_p10 }
  0x25   : > { %p845_p5 = pnand %p844_p6, %p840_p11 }
  0x27   : > { %848 = shalt.err (!%p845_p5)
}
  0x28   : > { %753 = dma.hbm_to_vmem [thread:$0]  (!%p1065_p8), %s287_s16, 128, %s289_s18, %s277_s21  }
  0x29   : > { %297 = sbr.rel (%p1020_p3) target bundleno = 1183 (0x49f), region = 52  ;;  %s1082_s26 = sand.u32 (!%p1020_p3), 1, %s926_s30  }
  0x2a   : > { %s720_s17 = sshll.u32 (!%p1020_p3), %s1082_s26, 3  ;;  %s300_s7 = scalar_lea.sflag (!%p1020_p3), [#allocation4], %s1082_s26 }
  0x2b   : > { %s303_s11 = scalar_lea.vmem (!%p1020_p3), [#allocation3], %s720_s17 }
  0x2e   : > { %909 = dma.done.wait (%p1047_p12), %s300_s7, 128  }
  0x2f   : > { %911 = vsyncadd (%p1047_p12), %s300_s7, 4294967168 }
  0x30   : > { %913 = dma.done.wait (%p48_p1), [#allocation7], 512  }
  0x31   : > { %915 = vsyncadd (%p48_p1), [#allocation7], 4294966784  ;;  %v939_v1 = vmov 0   ;;  %v344_v2 = vld [vmem:[%s1167_s1] sm:$0xff]  ;;  %s940_s24 = smov 1   ;;  %v729_v6 = vld [vmem:[%s1169_s3 + $0x8] sm:$0xff]  ;;  %v341_v10 = vlaneseq  ;;  %s633_s15 = scalar_lea.hbm %s1174_s8, %s1015_s13 }
  0x32   : > { %801 = vset.pattern.permute.xlu0 %v939_v1  ;;  %802 = vset.pattern.permute.xlu1 %v939_v1  ;;  %v343_v3 = vld [vmem:[%s303_s11] sm:$0xff]  ;;  %vm360_vm0 = vcmask 64512   ;;  %v941_v12 = vmov 0.0   ;;  %v415_v23 = vld [vmem:[#allocation6 + $0x8] sm:$0xff]  ;;  %v414_v27 = vld [vmem:[#allocation6] sm:$0xff]  ;;  %s942_s14 = smov 2  }
  0x33   : > { %803 = vset.pattern.permute.xlu2 %v939_v1  ;;  %347 = vperm.xlu0 %801, %v344_v2   ;;  %v602_v7 = vld [vmem:[%s1172_s6] sm:$0xff]  ;;  %v352_v8 = vld [vmem:[%s1168_s2 + $0x8] sm:$0xff]  ;;  %v342_v11 = vand.u32 127, %v341_v10  ;;  %v728_v37 = vld [vmem:[%s1168_s2 + $0x18] sm:$0xff]  ;;  %s340_s17 = scalar_lea.vmem [#allocation8], %s1082_s26  ;;  %s637_s11 = sshll.u32 %s633_s15, 4  ;;  %s638_s11 = int_to_ptr.hbm [resolvable:$true] %s637_s11 }
  0x34   : > { %v353_v9 = vld [vmem:[%s1169_s3] sm:$0xff]  ;;  %v733_v36 = vld [vmem:[%s1171_s5 + $0x8] sm:$0xff]  ;;  %v727_v41 = vld [vmem:[%s1168_s2 + $0x10] sm:$0xff]  ;;  %s635_s7 = sshll.u32 %s340_s17, 4  ;;  %s625_s4 = scalar_lea.sflag [#allocation5], %s1082_s26  ;;  %s636_s7 = int_to_ptr.vmem [resolvable:$true] %s635_s7 }
  0x35   : > { %409 = vperm.xlu1 %802, %v353_v9   ;;  %vm356_vm1 = vcmp.ge.s32.totalorder %v342_v11, 1  ;;  %v351_v16 = vld [vmem:[%s1168_s2] sm:$0xff]  ;;  %vm482_vm2 = vcmp.ge.s32.totalorder %v342_v11, 2  ;;  %v541_v49 = vld [vmem:[#allocation6 + $0x18] sm:$0xff]  ;;  %s884_s18 = scalar_lea.hbm %s1174_s8, 2 }
  0x36   : > { %v722_v13 = vsel %vm356_vm1, 1.0, %v941_v12  ;;  %v416_v24 = vld [vmem:[%s1171_s5] sm:$0xff]  ;;  %v730_v38 = vsel %vm482_vm2, 1.0, %v941_v12 }
  0x37   : > { %468 = vperm.xlu2 %803, %v416_v24   ;;  %v615_v48 = vld [vmem:[#allocation2] sm:$0x1]  ;;  %v540_v52 = vld [vmem:[#allocation6 + $0x10] sm:$0xff] }
  0x91   : > { %v469_v30 = vpop.permute.xlu2 %468 }
  0xa5   : > { %v348_v4 = vpop.permute.xlu0 %347 }
  0xa6   : > { %v350_v5 = vmul.f32 %v348_v4, %v343_v3 }
  0xa7   : > { %v410_v19 = vpop.permute.xlu1 %409 }
  0xa8   : > { %354 = vrot.lane.b32.xlu0 %v350_v5, %s940_s24  ;;  %379 = vmatpush.msra.mxu0 %v350_v5 }
  0xa9   : > { %723 = vmatmul.msk.f32.vlgmr.msra.gmra.mxu0 %vm360_vm0, %v352_v8 }
  0xb0   : > { %534 = vperm.xlu0 %801, %v729_v6  }
  0xb8   : > { %605 = vperm.xlu0 %801, %v602_v7  }
 0x11a   : > { %v355_v14 = vpop.permute.xlu0 %354 }
 0x11b   : > { %v359_v15 = vmul.f32 %v722_v13, %v355_v14 }
 0x11d   : > { %402 = vmatpush.msra.mxu1 %v359_v15 }
 0x11e   : > { %724 = vmatmul.msk.f32.vlgmr.msra.gmra.mxu1 %vm360_vm0, %v351_v16 }
 0x122   : > { %v535_v45 = vpop.permute.xlu0 %534 }
 0x126   : > { %v381_v17 = vpop.f32.mrf.mxu0 }
 0x12a   : > { %v606_v61 = vpop.permute.xlu0 %605 }
 0x19b   : > { %v404_v18 = vpop.f32.mrf.mxu1 }
 0x19c   : > { %v405_v20 = vadd.f32 %v404_v18, %v381_v17 }
 0x19e   : > { %v412_v21 = vadd.f32 %v410_v19, %v405_v20 }
 0x1a0   : > { %v413_v22 = vmax.f32 %v412_v21, 0.0 }
 0x1a2   : > { %417 = vrot.lane.b32.xlu1 %v413_v22, %s940_s24  ;;  %438 = vmatpush.msra.mxu2 %v413_v22 }
 0x1a3   : > { %725 = vmatmul.msk.f32.vlgmr.msra.gmra.mxu2 %vm360_vm0, %v415_v23 }
 0x214   : > { %v418_v25 = vpop.permute.xlu1 %417 }
 0x215   : > { %v419_v26 = vmul.f32 %v722_v13, %v418_v25 }
 0x217   : > { %461 = vmatpush.msra.mxu3 %v419_v26 }
 0x218   : > { %726 = vmatmul.msk.f32.vlgmr.msra.gmra.mxu3 %vm360_vm0, %v414_v27 }
 0x226   : > { %v440_v28 = vpop.f32.mrf.mxu2 }
 0x29b   : > { %v463_v29 = vpop.f32.mrf.mxu3 }
 0x29c   : > { %v464_v31 = vadd.f32 %v463_v29, %v440_v28 }
 0x29e   : > { %v471_v32 = vadd.f32 %v469_v30, %v464_v31 }
 0x2a0   : > { %v472_v33 = vmax.f32 %v471_v32, 0.0 }
 0x2a2   : > { %v473_v34 = vadd.f32 %v472_v33, %v350_v5 }
 0x2a4   : > { %v474_v35 = vmax.f32 %v473_v34, 0.0 }
 0x2a6   : > { %480 = vrot.lane.b32.xlu2 %v474_v35, %s942_s14  ;;  %504 = vmatpush.msrb.mxu0 %v474_v35 }
 0x2a7   : > { %731 = vmatmul.msk.f32.vlgmr.msrb.gmra.mxu0 %vm360_vm0, %v728_v37 }
 0x2ae   : > { %595 = vperm.xlu2 %803, %v733_v36  }
 0x300   : > { %v481_v39 = vpop.permute.xlu2 %480 }
 0x301   : > { %v485_v40 = vmul.f32 %v730_v38, %v481_v39 }
 0x303   : > { %527 = vmatpush.msrb.mxu1 %v485_v40 }
 0x304   : > { %732 = vmatmul.msk.f32.vlgmr.msrb.gmra.mxu1 %vm360_vm0, %v727_v41 }
 0x308   : > { %v596_v56 = vpop.permute.xlu2 %595 }
 0x324   : > { %v506_v42 = vpop.f32.mrf.mxu0 }
 0x381   : > { %v529_v43 = vpop.f32.mrf.mxu1 }
 0x382   : > { %v530_v44 = vadd.f32 %v529_v43, %v506_v42 }
 0x384   : > { %v537_v46 = vadd.f32 %v535_v45, %v530_v44 }
 0x386   : > { %v538_v47 = vmax.f32 %v537_v46, 0.0 }
 0x388   : > { %544 = vrot.lane.b32.xlu1 %v538_v47, %s942_s14  ;;  %565 = vmatpush.msrb.mxu2 %v538_v47  ;;  %s878_s14 = sshra.s32 %s638_s11, 4  ;;  %s879_s14 = int_to_ptr.hbm [resolvable:$true] %s878_s14 }
 0x389   : > { %734 = vmatmul.msk.f32.vlgmr.msrb.gmra.mxu2 %vm360_vm0, %v541_v49  ;;  %s880_s24 = scalar_lea.hbm %s879_s14, 1  ;;  %p885_p12 = scmp.lt.s32.totalorder %s879_s14, %s1174_s8 }
 0x38a   : > { %p881_p1 = scmp.ne.s32.totalorder %s879_s14, %s880_s24  ;;  %p886_p8 = scmp.lt.s32.totalorder %s884_s18, %s880_s24 }
 0x38c   : > { %p882_p3 = pnand %p881_p1, %p1051_p13  ;;  %p887_p7 = por %p886_p8, %p885_p12 }
 0x38e   : > { %p883_p5 = pneg %p882_p3 }
 0x390   : > { %618 = vperm.xlu1 %802, %v615_v48   ;;  %p888_p9 = pnand %p887_p7, %p883_p5 }
 0x3fa   : > { %v545_v50 = vpop.permute.xlu1 %544 }
 0x3fb   : > { %v546_v51 = vmul.f32 %v730_v38, %v545_v50 }
 0x3fd   : > { %588 = vmatpush.msrb.mxu3 %v546_v51 }
 0x3fe   : > { %735 = vmatmul.msk.f32.vlgmr.msrb.gmra.mxu3 %vm360_vm0, %v540_v52 }
 0x402   : > { %v619_v3 = vpop.permute.xlu1 %618 }
 0x403   : > { %v621_v5 = vperm.slane %v619_v3, 0 }
 0x40c   : > { %v567_v53 = vpop.f32.mrf.mxu2 }
 0x481   : > { %v590_v54 = vpop.f32.mrf.mxu3 }
 0x482   : > { %v591_v55 = vadd.f32 %v590_v54, %v567_v53 }
 0x484   : > { %v598_v57 = vadd.f32 %v596_v56, %v591_v55 }
 0x486   : > { %v599_v58 = vmax.f32 %v598_v57, 0.0 }
 0x488   : > { %v600_v59 = vadd.f32 %v599_v58, %v474_v35 }
 0x48a   : > { %v601_v60 = vmax.f32 %v600_v59, 0.0 }
 0x48c   : > { %v608_v62 = vmul.f32 %v606_v61, %v601_v60 }
 0x48e   : > { %v609_v63 = vrot.slane %v608_v62, 4 }
 0x490   : > { %v610_v0 = vadd.f32 %v609_v63, %v608_v62 }
 0x492   : > { %v611_v1 = vrot.slane %v610_v0, 2 }
 0x494   : > { %v612_v2 = vadd.f32 %v611_v1, %v610_v0 }
 0x496   : > { %v613_v4 = vrot.slane %v612_v2, 1 }
 0x498   : > { %v614_v6 = vadd.f32 %v613_v4, %v612_v2 }
 0x49a   : > { %v622_v7 = vadd.f32 %v621_v5, %v614_v6 }
 0x49c   : > { %623 = vst [vmem:[%s340_s17] sm:$0x1] %v622_v7 }
 0x49d   : > { %891 = shalt.err (!%p888_p9)
}
 0x49e   : > { %744 = dma.vmem_to_hbm [thread:$0]  (%p1051_p13), %s636_s7, 16, %s638_s11, %s625_s4  }
 0x49f PF: > { %s649_s26 = sand.u32 1, %s922_s29   ;;  %p1182_p10 = scmp.ge.s32.totalorder %s934_s10, 2 }
 0x4a0   : > { %s650_s22 = scalar_lea.sflag [#allocation5], %s649_s26 }
 0x4a1   : > { %p755_p11 = pnand %p1182_p10, %p1056_p4 }
 0x4a3   : > { %p756_p0 = pneg %p755_p11 }
 0x4a5   : > { %917 = dma.done.wait (%p756_p0), %s650_s22, 16  }
 0x4a6   : > { %919 = vsyncadd (%p756_p0), %s650_s22, 4294967280  ;;  %p24_p2 = scmp.ge.s32.totalorder %s1031_s20, 4   ;;  %s1183_s29 = smov %s926_s30 }
 0x4a7   : > { %s1184_s30 = smov %s930_s9  ;;  %s1185_s9 = smov %s1043_s23 }
 0x4a8   : > { %s1186_s10 = smov %s1031_s20  ;;  %26 = sbr.rel (!%p24_p2) target bundleno = 9 (0x9), region = 105 }
 0x4ad   :  { %655 = vsyncpa [#allocation4], 1 }
 0x4ae   :  { %657 = vsyncpa [#allocation4 + $0x1], 1 }
 0x4af   :  { %658 = vsyncpa [#allocation7], 1 }
 0x4b0   :  { %659 = vsyncpa [#allocation5], 1 }
 0x4b1   :  { %661 = vsyncpa [#allocation5 + $0x1], 1 }

</bundles_post_ra>
